<compile_context>
chip_gen: v6e
topology: v6e:2x2x1
jax: 0.10.0
libtpu: 0.0.40
codegen_flags: <defaults>
</compile_context>

<pallas_src>
import jax
import jax.numpy as jnp
from jax.experimental import pallas as pl
from jax.experimental.pallas import tpu as pltpu

_MIB = 1024 * 1024
_LANE = 128


def _zero_ablate_kernel(x_ref, o_ref):
    # Elementwise multiply on the VPU: preserves NaN/Inf/-0.0 exactly like
    # PyTorch's x * 0.0.
    o_ref[...] = x_ref[...] * 0.0


def _zero_fill_kernel(o_ref):
    # Write-only variant (no HBM read): outputs are +0.0 everywhere.
    o_ref[...] = jnp.zeros_like(o_ref)


def _sublane_multiple(dtype):
    # Sub-32-bit dtypes pack along sublanes: bf16 -> 16, int8/fp8 -> 32.
    itemsize = jnp.dtype(dtype).itemsize
    if itemsize >= 4:
        return 8
    if itemsize == 2:
        return 16
    return 32


def _round_up(n, m):
    return ((n + m - 1) // m) * m


def _vmem_capacity_bytes():
    try:
        return int(pltpu.get_tpu_info().vmem_capacity_bytes)
    except Exception:
        return 64 * _MIB  # conservative (v7x-sized) fallback


def _block_budget_bytes():
    # Streaming-op roofline: ~1 MiB blocks already reach ~85% of HBM BW;
    # 2-4 MiB amortizes the ~0.35 us/grid-step overhead further.  Keep the
    # block smaller on v7x (only 64 MiB physical VMEM per TensorCore).
    return 4 * _MIB if _vmem_capacity_bytes() >= 128 * _MIB else 2 * _MIB


def zero_ablation_forward(x, *, strict_ieee=True):
    """Pallas equivalent of ZeroAblationWrapper.forward: returns x * 0.0.

    strict_ieee=True  -> reads x and multiplies by 0.0 in-kernel (NaN/Inf and
                         signed zeros propagate exactly like PyTorch).
    strict_ieee=False -> write-only zero fill: half the HBM traffic, but all
                         outputs are +0.0 (no NaN/Inf propagation).
    """
    # PyTorch promotes integer/bool tensors * python-float 0.0 to the default
    # float dtype (float32); mirror that.
    if not jnp.issubdtype(x.dtype, jnp.floating):
        x = x.astype(jnp.float32)

    orig_shape = x.shape
    dtype = x.dtype
    itemsize = jnp.dtype(dtype).itemsize
    total = x.size

    if total == 0:
        return jnp.zeros(orig_shape, dtype)

    # Normalize to 3-D (lead, d1, d2), keeping the ORIGINAL trailing two dims.
    # Collapsing / adding leading dims is metadata-only (no relayout copy).
    if x.ndim == 0:
        x3 = x.reshape(1, 1, 1)
    elif x.ndim == 1:
        x3 = x.reshape(1, 1, x.shape[0])
    elif x.ndim == 2:
        x3 = x.reshape(1, x.shape[0], x.shape[1])
    else:
        x3 = x.reshape(-1, x.shape[-2], x.shape[-1])

    lead, d1, d2 = x3.shape
    sub = _sublane_multiple(dtype)
    budget = _block_budget_bytes()

    # Physical VMEM bytes of one (d1, d2) slice (sublane/lane padding included).
    slice_bytes = _round_up(d1, sub) * _round_up(d2, _LANE) * itemsize
    row_bytes = _round_up(d2, _LANE) * itemsize
    lane_aligned_rows = (d2 % _LANE == 0) and (d1 > sub)

    if lead == 1 and lane_aligned_rows:
        # 2-D slab with lane-aligned rows: tile the row axis directly.
        target = max(sub, (budget // row_bytes) // sub * sub)
        tile_r = min(d1, target)
        # Keep >= 2 grid steps so both v7x TensorCores get work.
        tile_r = min(tile_r, max(sub, _round_up(pl.cdiv(d1, 2), sub)))
        grid = (pl.cdiv(d1, tile_r),)
        block = (1, tile_r, d2)
        index_map = lambda i: (0, i, 0)
    elif lane_aligned_rows and slice_bytes > budget:
        # A single leading slice is bigger than one block: 2-D grid.
        target = max(sub, (budget // row_bytes) // sub * sub)
        tile_r = min(d1, target)
        grid = (lead, pl.cdiv(d1, tile_r))
        block = (1, tile_r, d2)
        index_map = lambda i, j: (i, j, 0)
    else:
        # Tile over the collapsed leading dim.  The block's trailing two dims
        # equal the full array dims, which is always legal per the (8,128)
        # rule; a ragged last dim only costs masked edge stores — far cheaper
        # than the relayout copies it avoids.
        tile_l = max(1, min(lead, budget // slice_bytes))
        if lead > 1:
            tile_l = min(tile_l, pl.cdiv(lead, 2))  # >= 2 steps -> v7x megacore
        grid = (pl.cdiv(lead, tile_l),)
        block = (tile_l, d1, d2)
        index_map = lambda i: (i, 0, 0)

    block_phys = (block[0] * _round_up(block[1], sub)
                  * _round_up(block[2], _LANE) * itemsize)
    vmem_cap = _vmem_capacity_bytes()
    # 2 operands x 2 pipeline buffers + slack; never below the common 32 MiB
    # scoped default and never above (near-)physical capacity.
    vmem_limit = int(min(vmem_cap - 4 * _MIB,
                         max(32 * _MIB, 4 * block_phys + 4 * _MIB)))

    out_spec = pl.BlockSpec(block, index_map)
    if strict_ieee:
        kernel = _zero_ablate_kernel
        in_specs = [pl.BlockSpec(block, index_map)]
        operands = (x3,)
        flops, bytes_accessed = total, 2 * total * itemsize
    else:
        kernel = _zero_fill_kernel
        in_specs = []
        operands = ()
        flops, bytes_accessed = 0, total * itemsize

    out3 = pl.pallas_call(
        kernel,
        out_shape=jax.ShapeDtypeStruct(x3.shape, dtype),
        grid_spec=pltpu.PrefetchScalarGridSpec(
            num_scalar_prefetch=0,
            grid=grid,
            in_specs=in_specs,
            out_specs=out_spec,
        ),
        compiler_params=pltpu.CompilerParams(
            dimension_semantics=("parallel",) * len(grid),
            vmem_limit_bytes=vmem_limit,
        ),
        cost_estimate=pl.CostEstimate(
            flops=flops,
            transcendentals=0,
            bytes_accessed=bytes_accessed,
        ),
    )(*operands)

    return out3.reshape(orig_shape)


if __name__ == "__main__":
    key = jax.random.PRNGKey(0)
    # Small NCHW input consistent with a typical wrapped-activation tensor.
    x = jax.random.normal(key, (2, 4, 16, 16), dtype=jnp.float32)
    # Exercise IEEE propagation: NaN * 0 = NaN, Inf * 0 = NaN.
    x = x.at[0, 0, 0, 0].set(jnp.nan)
    x = x.at[0, 1, 2, 3].set(jnp.inf)

    y = zero_ablation_forward(x)
    jax.block_until_ready(y)

    ref = x * 0.0
    assert y.shape == x.shape and y.dtype == x.dtype
    same = jnp.where(jnp.isnan(ref), jnp.isnan(y), y == ref)
    assert bool(jnp.all(same))

    # Lane-aligned 2-D path (row tiling, no relayout), sub-32-bit dtype.
    x2 = jax.random.normal(jax.random.PRNGKey(0), (64, 256), dtype=jnp.bfloat16)
    y2 = zero_ablation_forward(x2)
    jax.block_until_ready(y2)
    assert y2.shape == x2.shape and y2.dtype == x2.dtype
    assert bool(jnp.all(y2 == x2 * 0.0))

    # Write-only fast path (halved HBM traffic; outputs are +0.0 everywhere).
    y3 = zero_ablation_forward(x2, strict_ieee=False)
    jax.block_until_ready(y3)
    assert bool(jnp.all(y3 == 0.0))

    print("KERNEL_OK")
</pallas_src>

<mosaic_0001>
module attributes {stable_mosaic.version = 11 : i64} {
  func.func @_zero_ablate_kernel(%arg0: i32, %arg1: memref<4x16x16xf32, #tpu.memory_space<vmem>>, %arg2: memref<4x16x16xf32, #tpu.memory_space<vmem>>) attributes {dimension_semantics = [#tpu.dimension_semantics<parallel>], iteration_bounds = array<i64: 2>, scalar_prefetch = 0 : i64, scratch_operands = 0 : i64, tpu.core_type = #tpu.core_type<tc>, window_params = [{transform_indices = @transform_0, window_bounds = array<i64: 4, 16, 16>}, {transform_indices = @transform_1, window_bounds = array<i64: 4, 16, 16>}]} {
    %c0 = arith.constant 0 : index
    %c0_0 = arith.constant 0 : index
    %c0_1 = arith.constant 0 : index
    %0 = vector.load %arg1[%c0, %c0_0, %c0_1] : memref<4x16x16xf32, #tpu.memory_space<vmem>>, vector<4x16x16xf32>
    %cst = arith.constant 0.000000e+00 : f32
    %1 = vector.broadcast %cst : f32 to vector<4x16x16xf32>
    %2 = arith.mulf %0, %1 : vector<4x16x16xf32>
    %c0_2 = arith.constant 0 : index
    %c0_3 = arith.constant 0 : index
    %c0_4 = arith.constant 0 : index
    %3 = vector.load %arg2[%c0_2, %c0_3, %c0_4] : memref<4x16x16xf32, #tpu.memory_space<vmem>>, vector<4x16x16xf32>
    tpu.vector_store %arg2[%c0_2, %c0_3, %c0_4], %2 {strides = array<i32>} : memref<4x16x16xf32, #tpu.memory_space<vmem>>, vector<4x16x16xf32>,
    return
  }
  func.func @transform_0(%arg0: i32) -> (i32, i32, i32) {
    %c0_i32 = arith.constant 0 : i32
    %c0_i32_0 = arith.constant 0 : i32
    %c0_i32_1 = arith.constant 0 : i32
    return %arg0, %c0_i32, %c0_i32_0 : i32, i32, i32
  }
  func.func @transform_1(%arg0: i32) -> (i32, i32, i32) {
    %c0_i32 = arith.constant 0 : i32
    %c0_i32_0 = arith.constant 0 : i32
    %c0_i32_1 = arith.constant 0 : i32
    return %arg0, %c0_i32, %c0_i32_0 : i32, i32, i32
  }
}

</mosaic_0001>

<bundles_post_ra>
// kernel: tpu_custom_call.1
= control target key start
LH: loop header
LB: loop body
LE: loop exit
PB: predicated region body
PF: predicated region fallthrough
CT: control target
= control target key end

     0   :  { %6 = vsyncpa [#allocation3], 0  ;;  %s593_s0 = inlined_call_operand.hbm [shape: f32[8,16,16], index: 0, kind: input, shape index: {}]   ;;  %s594_s1 = inlined_call_operand.hbm [shape: f32[8,16,16], index: 1, kind: output, shape index: {}]  }
   0x1   :  { %8 = vsyncpa [#allocation3 + $0x1], 0 }
   0x2   :  { %9 = vsyncpa [#allocation4], 0 }
   0x3   :  { %11 = vsyncpa [#allocation4 + $0x1], 0  ;;  %s431_s6 = smov 0   ;;  %s433_s7 = smov 0  }
   0x4   :  { %s435_s8 = smov 0   ;;  %s437_s9 = smov 0  }
   0x5 LB: > { %s452_s10 = sadd.s32 4294967295, %s413_s9   ;;  %s251_s11 = sadd.s32 4294967294, %s413_s9   ;;  %s413_s9 = sphi %s437_s9, %s609_s9   ;;  %s409_s8 = sphi %s435_s8, %s608_s8   ;;  %s405_s7 = sphi %s433_s7, %s607_s7   ;;  %s401_s6 = sphi %s431_s6, %s606_s6  }
   0x6   : > { %s456_s12 = sadd.s32 1, %s413_s9   ;;  %s24_s13 = sadd.s32 1, %s409_s8 }
   0x7   : > { %s21_s14 = ssub.s32 %s413_s9, %s456_s12  ;;  %p31_p0 = scmp.ne.s32.totalorder %s409_s8, %s405_s7 }
   0x8   : > { %p22_p1 = scmp.eq.s32.totalorder %s21_s14, 0  ;;  %p32_p2 = scmp.eq.s32.totalorder %s413_s9, 0 }
   0x9   : > { %p37_p3 = scmp.ne.s32.totalorder %s405_s7, %s401_s6  ;;  %p38_p4 = scmp.eq.s32.totalorder %s452_s10, 0 }
   0xa   : > { %s468_s15 = scalar_select %p22_p1, %s409_s8, %s24_s13  }
   0xb   : > { %p470_p5 = por %p32_p2, %p31_p0  ;;  %p474_p6 = por %p38_p4, %p37_p3 }
   0xc   : > { %p61_p7 = scmp.eq.s32.totalorder %s452_s10, 1  ;;  %p67_p8 = scmp.eq.s32.totalorder %s251_s11, 1 }
   0xd   : > { %s598_s17 = scalar_select %p474_p6, 1, 0 }
   0xe   : > { %p283_p10 = scmp.lt.s32.totalorder %s413_s9, 2  ;;  %p481_p11 = por %p61_p7, %p31_p0 }
   0xf   : > { %p485_p12 = por %p67_p8, %p37_p3  ;;  %s87_s20 = sand.u32 1, %s409_s8  }
  0x10   : > { %s599_s18 = scalar_select %p481_p11, 1, 0 }
  0x11   : > { %s600_s19 = scalar_select %p485_p12, 1, 0 }
  0x12   : > { %s268_s21 = sshll.u32 %s413_s9, 10  ;;  %s254_s22 = sshll.u32 %s87_s20, 6 }
  0x13   : > { %s494_s25 = scalar_lea.hbm %s593_s0, %s268_s21  ;;  %s91_s26 = scalar_lea.vmem [#allocation2], %s254_s22 }
  0x14   : > { %s99_s27 = sshll.u32 %s91_s26, 4  ;;  %p498_p13 = pnand %p283_p10, %p470_p5  ;;  %s502_s27 = int_to_ptr.vmem [resolvable:$true] %s99_s27 }
  0x15   : > { %s504_s29 = scalar_lea.sflag [#allocation3], %s87_s20  ;;  %s321_s30 = scalar_lea.hbm %s494_s25, 1024 }
  0x16   : > { %p322_p0 = scmp.ne.s32.totalorder %s494_s25, %s321_s30  ;;  %p323_p1 = pneg %p498_p13 }
  0x17   : > { %s326_s4 = scalar_lea.hbm %s593_s0, 2048  ;;  %p327_p4 = scmp.lt.s32.totalorder %s494_s25, %s593_s0 }
  0x18   : > { %p324_p2 = pnand %p323_p1, %p322_p0  ;;  %p328_p5 = scmp.lt.s32.totalorder %s326_s4, %s321_s30 }
  0x1a   : > { %p325_p3 = pneg %p324_p2  ;;  %p329_p7 = por %p328_p5, %p327_p4 }
  0x1c   : > { %p330_p8 = pnand %p329_p7, %p325_p3 }
  0x1e   : > { %333 = shalt.err (!%p330_p8)
}
  0x1f   : > { %s334_s13 = scalar_lea.vmem %s502_s27, 1024  ;;  %s415_s14 = smov [#allocation2]  }
  0x20   : > { %p335_p10 = scmp.ne.s32.totalorder %s502_s27, %s334_s13  ;;  %s339_s16 = sshll.u32 %s415_s14, 4  ;;  %s340_s16 = int_to_ptr.vmem [resolvable:$false] %s339_s16 }
  0x21   : > { %s341_s20 = scalar_lea.vmem %s340_s16, 2048  ;;  %p342_p2 = scmp.lt.s32.totalorder %s502_s27, %s340_s16 }
  0x22   : > { %p337_p9 = pnand %p335_p10, %p323_p1  ;;  %p343_p12 = scmp.lt.s32.totalorder %s341_s20, %s334_s13 }
  0x24   : > { %p338_p0 = pneg %p337_p9  ;;  %p344_p11 = por %p343_p12, %p342_p2 }
  0x26   : > { %p345_p6 = pnand %p344_p11, %p338_p0 }
  0x28   : > { %348 = shalt.err (!%p345_p6)
}
  0x29   : > { %s416_s21 = smov 128   ;;  %s417_s22 = smov 8  }
  0x2a   : > { %278 = dma.hbm_to_vmem [thread:$0]  (!%p498_p13), %s494_s25, 1024, %s502_s27, %s504_s29, %s416_s21, %s416_s21, %s417_s22  }
  0x2b   : > { %p258_p9 = scmp.ge.s32.totalorder %s413_s9, 1  ;;  %p107_p1 = scmp.lt.s32.totalorder %s413_s9, 3 }
  0x2d   : > { %p108_p3 = pnand %p258_p9, %p107_p1 }
  0x2e   : > { %s528_s23 = sand.u32 (!%p108_p3), 1, %s405_s7   ;;  %p602_p6 = scmp.ne.s32.totalorder (!%p108_p3), %s598_s17, 0 }
  0x2f   : > { %111 = sbr.rel (%p108_p3) target bundleno = 80 (0x50), region = 24  ;;  %s259_s24 = sshll.u32 (!%p108_p3), %s528_s23, 6 }
  0x30   : > { %s114_s26 = scalar_lea.sflag (!%p108_p3), [#allocation3], %s528_s23  ;;  %s117_s30 = scalar_lea.vmem (!%p108_p3), [#allocation2], %s259_s24 }
  0x34   : > { %392 = dma.done.wait (%p602_p6), %s114_s26, 1024  }
  0x35   : > { %394 = vsyncadd (%p602_p6), %s114_s26, 4294966272  ;;  %s135_s25 = scalar_lea.vmem [#allocation5], %s259_s24  ;;  %s270_s28 = sshll.u32 %s452_s10, 10  ;;  %v138_v0 = vld [vmem:[%s117_s30] sm:$0xff]  ;;  %vm154_vm0 = vcmask 130048   ;;  %v139_v1 = vld [vmem:[%s117_s30 + $0x8] sm:$0xff] }
  0x36   : > { %s178_s27 = sshll.u32 %s135_s25, 4  ;;  %v140_v2 = vld [vmem:[%s117_s30 + $0x10] sm:$0xff]  ;;  %v146_v3 = vmul.f32 0.0, %v138_v0  ;;  %v147_v4 = vmul.f32 0.0, %v139_v1  ;;  %v141_v6 = vld [vmem:[%s117_s30 + $0x18] sm:$0xff]  ;;  %v142_v7 = vld [vmem:[%s117_s30 + $0x20] sm:$0xff]  ;;  %s542_s29 = scalar_lea.hbm %s594_s1, %s270_s28  ;;  %s537_s27 = int_to_ptr.vmem [resolvable:$true] %s178_s27 }
  0x37   : > { %v148_v5 = vmul.f32 0.0, %v140_v2  ;;  %v143_v8 = vld [vmem:[%s117_s30 + $0x28] sm:$0xff]  ;;  %v149_v9 = vmul.f32 0.0, %v141_v6  ;;  %v150_v10 = vmul.f32 0.0, %v142_v7  ;;  %v144_v12 = vld [vmem:[%s117_s30 + $0x30] sm:$0xff]  ;;  %v145_v13 = vld [vmem:[%s117_s30 + $0x38] sm:$0xff] }
  0x38   : > { %v151_v11 = vmul.f32 0.0, %v143_v8  ;;  %155 = vst.msk [vmem:[%s135_s25] sm:$0xff] %vm154_vm0, %v146_v3  ;;  %156 = vst.msk [vmem:[%s135_s25 + $0x8] sm:$0xff] %vm154_vm0, %v147_v4  ;;  %v152_v14 = vmul.f32 0.0, %v144_v12  ;;  %v153_v15 = vmul.f32 0.0, %v145_v13  ;;  %s164_s2 = scalar_lea.sflag [#allocation4], %s528_s23 }
  0x39   : > { %157 = vst.msk [vmem:[%s135_s25 + $0x10] sm:$0xff] %vm154_vm0, %v148_v5  ;;  %158 = vst.msk [vmem:[%s135_s25 + $0x18] sm:$0xff] %vm154_vm0, %v149_v9  ;;  %s349_s3 = scalar_lea.vmem %s537_s27, 1024  ;;  %p603_p12 = scmp.ne.s32.totalorder %s599_s18, 0 }
  0x3a   : > { %159 = vst.msk [vmem:[%s135_s25 + $0x20] sm:$0xff] %vm154_vm0, %v150_v10  ;;  %160 = vst.msk [vmem:[%s135_s25 + $0x28] sm:$0xff] %vm154_vm0, %v151_v11  ;;  %p350_p11 = scmp.ne.s32.totalorder %s537_s27, %s349_s3  ;;  %s418_s4 = smov [#allocation5]  }
  0x3b   : > { %161 = vst.msk [vmem:[%s135_s25 + $0x30] sm:$0xff] %vm154_vm0, %v152_v14  ;;  %162 = vst.msk [vmem:[%s135_s25 + $0x38] sm:$0xff] %vm154_vm0, %v153_v15  ;;  %s353_s5 = sshll.u32 %s418_s4, 4  ;;  %s354_s5 = int_to_ptr.vmem [resolvable:$false] %s353_s5 }
  0x3c   : > { %p351_p13 = pnand %p350_p11, %p603_p12  ;;  %s355_s11 = scalar_lea.vmem %s354_s5, 2048 }
  0x3d   : > { %p356_p5 = scmp.lt.s32.totalorder %s537_s27, %s354_s5  ;;  %p357_p7 = scmp.lt.s32.totalorder %s355_s11, %s349_s3 }
  0x3e   : > { %p352_p4 = pneg %p351_p13 }
  0x3f   : > { %p358_p8 = por %p357_p7, %p356_p5 }
  0x41   : > { %p359_p10 = pnand %p358_p8, %p352_p4 }
  0x43   : > { %362 = shalt.err (!%p359_p10)
}
  0x44   : > { %s363_s13 = scalar_lea.hbm %s542_s29, 1024  ;;  %s367_s20 = scalar_lea.hbm %s594_s1, 2048 }
  0x45   : > { %p364_p0 = scmp.ne.s32.totalorder %s542_s29, %s363_s13  ;;  %p368_p1 = scmp.lt.s32.totalorder %s542_s29, %s594_s1 }
  0x46   : > { %p369_p3 = scmp.lt.s32.totalorder %s367_s20, %s363_s13 }
  0x47   : > { %p365_p2 = pnand %p364_p0, %p603_p12 }
  0x48   : > { %p370_p6 = por %p369_p3, %p368_p1 }
  0x49   : > { %p366_p9 = pneg %p365_p2 }
  0x4b   : > { %p371_p11 = pnand %p370_p6, %p366_p9 }
  0x4d   : > { %374 = shalt.err (!%p371_p11)
}
  0x4e   : > { %s419_s24 = smov 128   ;;  %s420_s26 = smov 8  }
  0x4f   : > { %273 = dma.vmem_to_hbm [thread:$0]  (%p603_p12), %s537_s27, 1024, %s542_s29, %s164_s2, %s419_s24, %s419_s24, %s420_s26  }
  0x50 PF: > { %s193_s30 = sand.u32 1, %s401_s6   ;;  %p604_p13 = scmp.ne.s32.totalorder %s600_s19, 0 }
  0x51   : > { %p605_p4 = scmp.ge.s32.totalorder %s413_s9, 2  ;;  %s194_s25 = scalar_lea.sflag [#allocation4], %s193_s30 }
  0x53   : > { %p280_p5 = pnand %p605_p4, %p604_p13 }
  0x55   : > { %p281_p7 = pneg %p280_p5 }
  0x57   : > { %396 = dma.done.wait (%p281_p7), %s194_s25, 1024  }
  0x58   : > { %398 = vsyncadd (%p281_p7), %s194_s25, 4294966272  ;;  %p14_p8 = scmp.ge.s32.totalorder %s456_s12, 4   ;;  %s606_s6 = smov %s405_s7 }
  0x59   : > { %s607_s7 = smov %s409_s8  ;;  %s608_s8 = smov %s468_s15 }
  0x5a   : > { %s609_s9 = smov %s456_s12  ;;  %16 = sbr.rel (!%p14_p8) target bundleno = 5 (0x5), region = 69 }
  0x5f   :  { %199 = vsyncpa [#allocation3], 1 }
  0x60   :  { %201 = vsyncpa [#allocation3 + $0x1], 1 }
  0x61   :  { %202 = vsyncpa [#allocation4], 1 }
  0x62   :  { %204 = vsyncpa [#allocation4 + $0x1], 1 }

</bundles_post_ra>
